<compile_context>
chip_gen: v7x
topology: tpu7x:2x2x1
jax: 0.10.0
libtpu: 0.0.40
codegen_flags: <defaults>
</compile_context>

<pallas_src>
import functools

import jax
import jax.numpy as jnp
from jax.experimental import pallas as pl
from jax.experimental.pallas import tpu as pltpu


def _mcross_attn_kernel(xq_ref, xk_ref, wq_ref, wk_ref, wv_ref, wp_ref, bp_ref,
                        o_ref, *, tb, num_heads, seq_len, head_dim, dim, scale):
    H, N, hd, D = num_heads, seq_len, head_dim, dim
    BH = tb * H

    # Fused q/k/v projections: a single matmul each over all (batch, head) rows
    # of this tile (fills MXU sublanes instead of 3*H tiny padded matmuls).
    xk = xk_ref[...].reshape(BH * N, hd)          # (TB*H*N, hd)
    xq = xq_ref[...].reshape(BH, hd)              # (TB*H,   hd)

    k = jnp.dot(xk, wk_ref[...], preferred_element_type=jnp.float32)  # (BH*N, D)
    v = jnp.dot(xk, wv_ref[...], preferred_element_type=jnp.float32)  # (BH*N, D)
    q = jnp.dot(xq, wq_ref[...], preferred_element_type=jnp.float32)  # (BH,   D)

    k3 = k.reshape(BH, N, D)
    v3 = v.reshape(BH, N, D)
    q3 = q.reshape(BH, 1, D)

    # Single-query attention, batched over (batch, head); no explicit k.T.
    s = jnp.einsum('bqd,bkd->bqk', q3, k3,
                   preferred_element_type=jnp.float32) * scale        # (BH,1,N)
    m = jnp.max(s, axis=-1, keepdims=True)
    p = jnp.exp(s - m)
    denom = jnp.sum(p, axis=-1, keepdims=True)
    attn = p * pl.reciprocal(denom, approx=True)                      # softmax
    o = jnp.einsum('bqk,bkd->bqd', attn, v3,
                   preferred_element_type=jnp.float32)                # (BH,1,D)

    # Final projection without a lane-axis concat: out = sum_h o_h @ wp[h] + b.
    o3 = o.reshape(tb, H, D)                                          # (TB,H,D)
    out = jnp.zeros((tb, D), dtype=jnp.float32)
    for h in range(H):                                # static unroll, H is small
        out = out + jnp.dot(o3[:, h, :], wp_ref[h],
                            preferred_element_type=jnp.float32)
    out = out + bp_ref[...]                           # (1, D) broadcasts
    o_ref[:, 0, :] = out.astype(o_ref.dtype)


def mcross_attention(x, wq, wk, wv, wp, bp, *, num_heads, batch_tile=None,
                     param_dtype=None):
    """x: (B, N, C). wq/wk/wv: PyTorch Linear weights (dim, head_dim).
    wp: (dim, dim*num_heads), bp: (dim,). Returns (B, 1, dim)."""
    B, N, C = x.shape
    D = C
    H = num_heads
    assert C % H == 0
    hd = D // H
    scale = hd ** (-0.5)
    tb = B if batch_tile is None else batch_tile
    assert B % tb == 0, (B, tb)

    if param_dtype is not None:                    # e.g. jnp.bfloat16 on v6e/v7x
        x = x.astype(param_dtype)
        wq = wq.astype(param_dtype)
        wk = wk.astype(param_dtype)
        wv = wv.astype(param_dtype)
        wp = wp.astype(param_dtype)

    # Host-side layout prep (head split / transposes happen once, outside the kernel).
    xk = jnp.transpose(x.reshape(B, N, H, hd), (0, 2, 1, 3))    # (B, H, N, hd)
    xq = x[:, 0, :].reshape(B, H, hd)                           # (B, H, hd)
    wq_t, wk_t, wv_t = wq.T, wk.T, wv.T                         # (hd, D) each
    wp_r = wp.T.reshape(H, D, D)                  # wp_r[h, d, e] = wp[e, h*D+d]
    bp2 = bp.reshape(1, D).astype(jnp.float32)

    kernel = functools.partial(_mcross_attn_kernel, tb=tb, num_heads=H,
                               seq_len=N, head_dim=hd, dim=D, scale=scale)

    # Explicit VMEM budget (wp is the dominant resident buffer); cap at 64 MiB
    # so the request is valid on v7x as well as v5e/v6e.
    isz = x.dtype.itemsize
    block_bytes = (tb * H * hd + tb * H * N * hd + 3 * hd * D + H * D * D) * isz \
                  + (D + tb * D) * 4
    interm_bytes = (3 * tb * H * N * D + 6 * tb * H * D) * 4
    vmem_limit = int(min(max(2 * block_bytes + interm_bytes + (2 << 20), 32 << 20),
                         64 << 20))

    return pl.pallas_call(
        kernel,
        out_shape=jax.ShapeDtypeStruct((B, 1, D), x.dtype),
        grid=(B // tb,),
        in_specs=[
            pl.BlockSpec((tb, H, hd),    lambda b: (b, 0, 0)),
            pl.BlockSpec((tb, H, N, hd), lambda b: (b, 0, 0, 0)),
            pl.BlockSpec((hd, D),        lambda b: (0, 0)),
            pl.BlockSpec((hd, D),        lambda b: (0, 0)),
            pl.BlockSpec((hd, D),        lambda b: (0, 0)),
            pl.BlockSpec((H, D, D),      lambda b: (0, 0, 0)),
            pl.BlockSpec((1, D),         lambda b: (0, 0)),
        ],
        out_specs=pl.BlockSpec((tb, 1, D), lambda b: (b, 0, 0)),
        compiler_params=pltpu.CompilerParams(
            dimension_semantics=("parallel",),
            vmem_limit_bytes=vmem_limit),
    )(xq, xk, wq_t, wk_t, wv_t, wp_r, bp2)


def mcross_attention_ref(x, wq, wk, wv, wp, bp, *, num_heads):
    """Pure-JAX reference mirroring the PyTorch forward exactly."""
    B, N, C = x.shape
    head_dim = C // num_heads
    scale = head_dim ** (-0.5)
    xr = x.reshape(B, N, num_heads, head_dim)
    q = jnp.einsum('bnhd,ed->bnhe', xr[:, 0:1], wq).transpose(0, 2, 1, 3)  # (B,H,1,dim)
    k = jnp.einsum('bnhd,ed->bnhe', xr, wk).transpose(0, 2, 1, 3)          # (B,H,N,dim)
    v = jnp.einsum('bnhd,ed->bnhe', xr, wv).transpose(0, 2, 1, 3)          # (B,H,N,dim)
    attn = jnp.einsum('bhid,bhjd->bhij', q, k) * scale
    attn = jax.nn.softmax(attn, axis=-1)
    o = jnp.einsum('bhij,bhjd->bhid', attn, v).transpose(0, 2, 1, 3)       # (B,1,H,dim)
    o = o.reshape(B, 1, C * num_heads)
    return jnp.einsum('bne,de->bnd', o, wp) + bp


if __name__ == "__main__":
    B, N, dim, num_heads = 2, 8, 32, 8
    head_dim = dim // num_heads

    key = jax.random.PRNGKey(0)
    kx, kq, kk, kv, kp, kb = jax.random.split(key, 6)

    x = jax.random.normal(kx, (B, N, dim), dtype=jnp.float32)
    # nn.Linear weight shapes: (out_features, in_features); qkv_bias=False.
    wq = 0.02 * jax.random.normal(kq, (dim, head_dim), dtype=jnp.float32)
    wk = 0.02 * jax.random.normal(kk, (dim, head_dim), dtype=jnp.float32)
    wv = 0.02 * jax.random.normal(kv, (dim, head_dim), dtype=jnp.float32)
    wp = 0.02 * jax.random.normal(kp, (dim, dim * num_heads), dtype=jnp.float32)
    bp = 0.02 * jax.random.normal(kb, (dim,), dtype=jnp.float32)

    ref = jax.block_until_ready(
        mcross_attention_ref(x, wq, wk, wv, wp, bp, num_heads=num_heads))

    # Whole batch in one grid step (TB = B): single-step schedule.
    out = mcross_attention(x, wq, wk, wv, wp, bp, num_heads=num_heads)
    out = jax.block_until_ready(out)
    assert out.shape == (B, 1, dim), out.shape
    assert jnp.allclose(out, ref, atol=1e-3, rtol=1e-3), float(
        jnp.max(jnp.abs(out - ref)))

    # Multi-step grid (TB = 1): parallel batch axis length >= 2 (v7x two TCs).
    out2 = mcross_attention(x, wq, wk, wv, wp, bp, num_heads=num_heads,
                            batch_tile=1)
    out2 = jax.block_until_ready(out2)
    assert jnp.allclose(out2, ref, atol=1e-3, rtol=1e-3), float(
        jnp.max(jnp.abs(out2 - ref)))

    print("KERNEL_OK")
</pallas_src>

<mosaic_0001>
module attributes {stable_mosaic.version = 11 : i64} {
  func.func @_mcross_attn_kernel(%arg0: i32, %arg1: memref<2x8x4xf32, #tpu.memory_space<vmem>>, %arg2: memref<2x8x8x4xf32, #tpu.memory_space<vmem>>, %arg3: memref<4x32xf32, #tpu.memory_space<vmem>>, %arg4: memref<4x32xf32, #tpu.memory_space<vmem>>, %arg5: memref<4x32xf32, #tpu.memory_space<vmem>>, %arg6: memref<8x32x32xf32, #tpu.memory_space<vmem>>, %arg7: memref<1x32xf32, #tpu.memory_space<vmem>>, %arg8: memref<2x1x32xf32, #tpu.memory_space<vmem>>) attributes {dimension_semantics = [#tpu.dimension_semantics<parallel>], iteration_bounds = array<i64: 1>, scalar_prefetch = 0 : i64, scratch_operands = 0 : i64, tpu.core_type = #tpu.core_type<tc>, window_params = [{transform_indices = @transform_0, window_bounds = array<i64: 2, 8, 4>}, {transform_indices = @transform_1, window_bounds = array<i64: 2, 8, 8, 4>}, {pipeline_mode = #tpu.pipeline_mode<synchronous>, transform_indices = @transform_2, window_bounds = array<i64: 4, 32>}, {pipeline_mode = #tpu.pipeline_mode<synchronous>, transform_indices = @transform_3, window_bounds = array<i64: 4, 32>}, {pipeline_mode = #tpu.pipeline_mode<synchronous>, transform_indices = @transform_4, window_bounds = array<i64: 4, 32>}, {pipeline_mode = #tpu.pipeline_mode<synchronous>, transform_indices = @transform_5, window_bounds = array<i64: 8, 32, 32>}, {pipeline_mode = #tpu.pipeline_mode<synchronous>, transform_indices = @transform_6, window_bounds = array<i64: 1, 32>}, {transform_indices = @transform_7, window_bounds = array<i64: 2, 1, 32>}]} {
    %c0 = arith.constant 0 : index
    %c0_0 = arith.constant 0 : index
    %c0_1 = arith.constant 0 : index
    %c0_2 = arith.constant 0 : index
    %0 = vector.load %arg2[%c0, %c0_0, %c0_1, %c0_2] : memref<2x8x8x4xf32, #tpu.memory_space<vmem>>, vector<2x8x8x4xf32>
    %1 = vector.shape_cast %0 : vector<2x8x8x4xf32> to vector<128x4xf32>
    %c0_3 = arith.constant 0 : index
    %c0_4 = arith.constant 0 : index
    %c0_5 = arith.constant 0 : index
    %2 = vector.load %arg1[%c0_3, %c0_4, %c0_5] : memref<2x8x4xf32, #tpu.memory_space<vmem>>, vector<2x8x4xf32>
    %3 = vector.shape_cast %2 : vector<2x8x4xf32> to vector<16x4xf32>
    %c0_6 = arith.constant 0 : index
    %c0_7 = arith.constant 0 : index
    %4 = vector.load %arg4[%c0_6, %c0_7] : memref<4x32xf32, #tpu.memory_space<vmem>>, vector<4x32xf32>
    %cst = arith.constant dense<0.000000e+00> : vector<128x32xf32>
    %5 = tpu.matmul %1, %4, %cst {dimension_numbers = #tpu.dot_dimension_numbers<[1], [0], [0], [1], [0, 0, 1, 1], [], []>} : vector<128x4xf32>, vector<4x32xf32>, vector<128x32xf32> -> vector<128x32xf32>
    %c0_8 = arith.constant 0 : index
    %c0_9 = arith.constant 0 : index
    %6 = vector.load %arg5[%c0_8, %c0_9] : memref<4x32xf32, #tpu.memory_space<vmem>>, vector<4x32xf32>
    %cst_10 = arith.constant dense<0.000000e+00> : vector<128x32xf32>
    %7 = tpu.matmul %1, %6, %cst_10 {dimension_numbers = #tpu.dot_dimension_numbers<[1], [0], [0], [1], [0, 0, 1, 1], [], []>} : vector<128x4xf32>, vector<4x32xf32>, vector<128x32xf32> -> vector<128x32xf32>
    %c0_11 = arith.constant 0 : index
    %c0_12 = arith.constant 0 : index
    %8 = vector.load %arg3[%c0_11, %c0_12] : memref<4x32xf32, #tpu.memory_space<vmem>>, vector<4x32xf32>
    %cst_13 = arith.constant dense<0.000000e+00> : vector<16x32xf32>
    %9 = tpu.matmul %3, %8, %cst_13 {dimension_numbers = #tpu.dot_dimension_numbers<[1], [0], [0], [1], [0, 0, 1, 1], [], []>} : vector<16x4xf32>, vector<4x32xf32>, vector<16x32xf32> -> vector<16x32xf32>
    %10 = vector.shape_cast %5 : vector<128x32xf32> to vector<16x8x32xf32>
    %11 = vector.shape_cast %7 : vector<128x32xf32> to vector<16x8x32xf32>
    %12 = vector.shape_cast %9 : vector<16x32xf32> to vector<16x1x32xf32>
    "tpu.trace_start"() <{level = 10 : i32, message = "bqd,bkd->bqk"}> : () -> ()
    %cst_14 = arith.constant dense<0.000000e+00> : vector<16x1x8xf32>
    %13 = tpu.matmul %12, %10, %cst_14 {dimension_numbers = #tpu.dot_dimension_numbers<[2], [2], [1], [1], [0, 0, 0, 1, 1, 1], [0], [0]>} : vector<16x1x32xf32>, vector<16x8x32xf32>, vector<16x1x8xf32> -> vector<16x1x8xf32>
    "tpu.trace_stop"() : () -> ()
    %cst_15 = arith.constant 5.000000e-01 : f32
    %14 = vector.broadcast %cst_15 : f32 to vector<16x1x8xf32>
    %15 = arith.mulf %13, %14 : vector<16x1x8xf32>
    %cst_16 = arith.constant dense<0xFF800000> : vector<16x1xf32>
    %16 = vector.multi_reduction <maximumf>, %15, %cst_16 [2] : vector<16x1x8xf32> to vector<16x1xf32>
    %17 = vector.shape_cast %16 : vector<16x1xf32> to vector<16x1x1xf32>
    %18 = vector.broadcast %17 : vector<16x1x1xf32> to vector<16x1x8xf32>
    %19 = arith.subf %15, %18 : vector<16x1x8xf32>
    %20 = math.exp %19 : vector<16x1x8xf32>
    %cst_17 = arith.constant dense<0.000000e+00> : vector<16x1xf32>
    %21 = vector.multi_reduction <add>, %20, %cst_17 [2] : vector<16x1x8xf32> to vector<16x1xf32>
    %22 = vector.shape_cast %21 : vector<16x1xf32> to vector<16x1x1xf32>
    %23 = tpu.reciprocal %22 {approx = true} : vector<16x1x1xf32> -> vector<16x1x1xf32>
    %24 = vector.broadcast %23 : vector<16x1x1xf32> to vector<16x1x8xf32>
    %25 = arith.mulf %20, %24 : vector<16x1x8xf32>
    "tpu.trace_start"() <{level = 10 : i32, message = "bqk,bkd->bqd"}> : () -> ()
    %cst_18 = arith.constant dense<0.000000e+00> : vector<16x1x32xf32>
    %26 = tpu.matmul %25, %11, %cst_18 {dimension_numbers = #tpu.dot_dimension_numbers<[2], [1], [1], [2], [0, 0, 0, 1, 1, 2], [0], [0]>} : vector<16x1x8xf32>, vector<16x8x32xf32>, vector<16x1x32xf32> -> vector<16x1x32xf32>
    "tpu.trace_stop"() : () -> ()
    %27 = vector.shape_cast %26 : vector<16x1x32xf32> to vector<2x8x32xf32>
    %cst_19 = arith.constant 0.000000e+00 : f32
    %28 = vector.broadcast %cst_19 : f32 to vector<2x32xf32>
    %29 = vector.extract_strided_slice %27 {offsets = [0, 0, 0], sizes = [2, 1, 32], strides = [1, 1, 1]} : vector<2x8x32xf32> to vector<2x1x32xf32>
    %30 = vector.shape_cast %29 : vector<2x1x32xf32> to vector<2x32xf32>
    %c0_20 = arith.constant 0 : index
    %c0_21 = arith.constant 0 : index
    %c0_22 = arith.constant 0 : index
    %31 = vector.load %arg6[%c0_20, %c0_21, %c0_22] : memref<8x32x32xf32, #tpu.memory_space<vmem>>, vector<1x32x32xf32>
    %32 = vector.shape_cast %31 : vector<1x32x32xf32> to vector<32x32xf32>
    %cst_23 = arith.constant dense<0.000000e+00> : vector<2x32xf32>
    %33 = tpu.matmul %30, %32, %cst_23 {dimension_numbers = #tpu.dot_dimension_numbers<[1], [0], [0], [1], [0, 0, 1, 1], [], []>} : vector<2x32xf32>, vector<32x32xf32>, vector<2x32xf32> -> vector<2x32xf32>
    %34 = arith.addf %28, %33 : vector<2x32xf32>
    %35 = vector.extract_strided_slice %27 {offsets = [0, 1, 0], sizes = [2, 1, 32], strides = [1, 1, 1]} : vector<2x8x32xf32> to vector<2x1x32xf32>
    %36 = vector.shape_cast %35 : vector<2x1x32xf32> to vector<2x32xf32>
    %c1 = arith.constant 1 : index
    %c0_24 = arith.constant 0 : index
    %c0_25 = arith.constant 0 : index
    %37 = vector.load %arg6[%c1, %c0_24, %c0_25] : memref<8x32x32xf32, #tpu.memory_space<vmem>>, vector<1x32x32xf32>
    %38 = vector.shape_cast %37 : vector<1x32x32xf32> to vector<32x32xf32>
    %cst_26 = arith.constant dense<0.000000e+00> : vector<2x32xf32>
    %39 = tpu.matmul %36, %38, %cst_26 {dimension_numbers = #tpu.dot_dimension_numbers<[1], [0], [0], [1], [0, 0, 1, 1], [], []>} : vector<2x32xf32>, vector<32x32xf32>, vector<2x32xf32> -> vector<2x32xf32>
    %40 = arith.addf %34, %39 : vector<2x32xf32>
    %41 = vector.extract_strided_slice %27 {offsets = [0, 2, 0], sizes = [2, 1, 32], strides = [1, 1, 1]} : vector<2x8x32xf32> to vector<2x1x32xf32>
    %42 = vector.shape_cast %41 : vector<2x1x32xf32> to vector<2x32xf32>
    %c2 = arith.constant 2 : index
    %c0_27 = arith.constant 0 : index
    %c0_28 = arith.constant 0 : index
    %43 = vector.load %arg6[%c2, %c0_27, %c0_28] : memref<8x32x32xf32, #tpu.memory_space<vmem>>, vector<1x32x32xf32>
    %44 = vector.shape_cast %43 : vector<1x32x32xf32> to vector<32x32xf32>
    %cst_29 = arith.constant dense<0.000000e+00> : vector<2x32xf32>
    %45 = tpu.matmul %42, %44, %cst_29 {dimension_numbers = #tpu.dot_dimension_numbers<[1], [0], [0], [1], [0, 0, 1, 1], [], []>} : vector<2x32xf32>, vector<32x32xf32>, vector<2x32xf32> -> vector<2x32xf32>
    %46 = arith.addf %40, %45 : vector<2x32xf32>
    %47 = vector.extract_strided_slice %27 {offsets = [0, 3, 0], sizes = [2, 1, 32], strides = [1, 1, 1]} : vector<2x8x32xf32> to vector<2x1x32xf32>
    %48 = vector.shape_cast %47 : vector<2x1x32xf32> to vector<2x32xf32>
    %c3 = arith.constant 3 : index
    %c0_30 = arith.constant 0 : index
    %c0_31 = arith.constant 0 : index
    %49 = vector.load %arg6[%c3, %c0_30, %c0_31] : memref<8x32x32xf32, #tpu.memory_space<vmem>>, vector<1x32x32xf32>
    %50 = vector.shape_cast %49 : vector<1x32x32xf32> to vector<32x32xf32>
    %cst_32 = arith.constant dense<0.000000e+00> : vector<2x32xf32>
    %51 = tpu.matmul %48, %50, %cst_32 {dimension_numbers = #tpu.dot_dimension_numbers<[1], [0], [0], [1], [0, 0, 1, 1], [], []>} : vector<2x32xf32>, vector<32x32xf32>, vector<2x32xf32> -> vector<2x32xf32>
    %52 = arith.addf %46, %51 : vector<2x32xf32>
    %53 = vector.extract_strided_slice %27 {offsets = [0, 4, 0], sizes = [2, 1, 32], strides = [1, 1, 1]} : vector<2x8x32xf32> to vector<2x1x32xf32>
    %54 = vector.shape_cast %53 : vector<2x1x32xf32> to vector<2x32xf32>
    %c4 = arith.constant 4 : index
    %c0_33 = arith.constant 0 : index
    %c0_34 = arith.constant 0 : index
    %55 = vector.load %arg6[%c4, %c0_33, %c0_34] : memref<8x32x32xf32, #tpu.memory_space<vmem>>, vector<1x32x32xf32>
    %56 = vector.shape_cast %55 : vector<1x32x32xf32> to vector<32x32xf32>
    %cst_35 = arith.constant dense<0.000000e+00> : vector<2x32xf32>
    %57 = tpu.matmul %54, %56, %cst_35 {dimension_numbers = #tpu.dot_dimension_numbers<[1], [0], [0], [1], [0, 0, 1, 1], [], []>} : vector<2x32xf32>, vector<32x32xf32>, vector<2x32xf32> -> vector<2x32xf32>
    %58 = arith.addf %52, %57 : vector<2x32xf32>
    %59 = vector.extract_strided_slice %27 {offsets = [0, 5, 0], sizes = [2, 1, 32], strides = [1, 1, 1]} : vector<2x8x32xf32> to vector<2x1x32xf32>
    %60 = vector.shape_cast %59 : vector<2x1x32xf32> to vector<2x32xf32>
    %c5 = arith.constant 5 : index
    %c0_36 = arith.constant 0 : index
    %c0_37 = arith.constant 0 : index
    %61 = vector.load %arg6[%c5, %c0_36, %c0_37] : memref<8x32x32xf32, #tpu.memory_space<vmem>>, vector<1x32x32xf32>
    %62 = vector.shape_cast %61 : vector<1x32x32xf32> to vector<32x32xf32>
    %cst_38 = arith.constant dense<0.000000e+00> : vector<2x32xf32>
    %63 = tpu.matmul %60, %62, %cst_38 {dimension_numbers = #tpu.dot_dimension_numbers<[1], [0], [0], [1], [0, 0, 1, 1], [], []>} : vector<2x32xf32>, vector<32x32xf32>, vector<2x32xf32> -> vector<2x32xf32>
    %64 = arith.addf %58, %63 : vector<2x32xf32>
    %65 = vector.extract_strided_slice %27 {offsets = [0, 6, 0], sizes = [2, 1, 32], strides = [1, 1, 1]} : vector<2x8x32xf32> to vector<2x1x32xf32>
    %66 = vector.shape_cast %65 : vector<2x1x32xf32> to vector<2x32xf32>
    %c6 = arith.constant 6 : index
    %c0_39 = arith.constant 0 : index
    %c0_40 = arith.constant 0 : index
    %67 = vector.load %arg6[%c6, %c0_39, %c0_40] : memref<8x32x32xf32, #tpu.memory_space<vmem>>, vector<1x32x32xf32>
    %68 = vector.shape_cast %67 : vector<1x32x32xf32> to vector<32x32xf32>
    %cst_41 = arith.constant dense<0.000000e+00> : vector<2x32xf32>
    %69 = tpu.matmul %66, %68, %cst_41 {dimension_numbers = #tpu.dot_dimension_numbers<[1], [0], [0], [1], [0, 0, 1, 1], [], []>} : vector<2x32xf32>, vector<32x32xf32>, vector<2x32xf32> -> vector<2x32xf32>
    %70 = arith.addf %64, %69 : vector<2x32xf32>
    %71 = vector.extract_strided_slice %27 {offsets = [0, 7, 0], sizes = [2, 1, 32], strides = [1, 1, 1]} : vector<2x8x32xf32> to vector<2x1x32xf32>
    %72 = vector.shape_cast %71 : vector<2x1x32xf32> to vector<2x32xf32>
    %c7 = arith.constant 7 : index
    %c0_42 = arith.constant 0 : index
    %c0_43 = arith.constant 0 : index
    %73 = vector.load %arg6[%c7, %c0_42, %c0_43] : memref<8x32x32xf32, #tpu.memory_space<vmem>>, vector<1x32x32xf32>
    %74 = vector.shape_cast %73 : vector<1x32x32xf32> to vector<32x32xf32>
    %cst_44 = arith.constant dense<0.000000e+00> : vector<2x32xf32>
    %75 = tpu.matmul %72, %74, %cst_44 {dimension_numbers = #tpu.dot_dimension_numbers<[1], [0], [0], [1], [0, 0, 1, 1], [], []>} : vector<2x32xf32>, vector<32x32xf32>, vector<2x32xf32> -> vector<2x32xf32>
    %76 = arith.addf %70, %75 : vector<2x32xf32>
    %c0_45 = arith.constant 0 : index
    %c0_46 = arith.constant 0 : index
    %77 = vector.load %arg7[%c0_45, %c0_46] : memref<1x32xf32, #tpu.memory_space<vmem>>, vector<1x32xf32>
    %78 = vector.broadcast %77 : vector<1x32xf32> to vector<2x32xf32>
    %79 = arith.addf %76, %78 : vector<2x32xf32>
    %c0_47 = arith.constant 0 : index
    %c0_48 = arith.constant 0 : index
    %c0_49 = arith.constant 0 : index
    %80 = vector.load %arg8[%c0_47, %c0_48, %c0_49] : memref<2x1x32xf32, #tpu.memory_space<vmem>>, vector<2x1x32xf32>
    %81 = vector.shape_cast %80 : vector<2x1x32xf32> to vector<2x32xf32>
    %82 = vector.shape_cast %79 : vector<2x32xf32> to vector<2x1x32xf32>
    tpu.vector_store %arg8[%c0_47, %c0_48, %c0_49], %82 {strides = array<i32>} : memref<2x1x32xf32, #tpu.memory_space<vmem>>, vector<2x1x32xf32>,
    return
  }
  func.func @transform_0(%arg0: i32) -> (i32, i32, i32) {
    %c0_i32 = arith.constant 0 : i32
    %c0_i32_0 = arith.constant 0 : i32
    %c0_i32_1 = arith.constant 0 : i32
    return %arg0, %c0_i32, %c0_i32_0 : i32, i32, i32
  }
  func.func @transform_1(%arg0: i32) -> (i32, i32, i32, i32) {
    %c0_i32 = arith.constant 0 : i32
    %c0_i32_0 = arith.constant 0 : i32
    %c0_i32_1 = arith.constant 0 : i32
    %c0_i32_2 = arith.constant 0 : i32
    return %arg0, %c0_i32, %c0_i32_0, %c0_i32_1 : i32, i32, i32, i32
  }
  func.func @transform_2(%arg0: i32) -> (i32, i32) {
    %c0_i32 = arith.constant 0 : i32
    %c0_i32_0 = arith.constant 0 : i32
    %c0_i32_1 = arith.constant 0 : i32
    return %c0_i32, %c0_i32_0 : i32, i32
  }
  func.func @transform_3(%arg0: i32) -> (i32, i32) {
    %c0_i32 = arith.constant 0 : i32
    %c0_i32_0 = arith.constant 0 : i32
    %c0_i32_1 = arith.constant 0 : i32
    return %c0_i32, %c0_i32_0 : i32, i32
  }
  func.func @transform_4(%arg0: i32) -> (i32, i32) {
    %c0_i32 = arith.constant 0 : i32
    %c0_i32_0 = arith.constant 0 : i32
    %c0_i32_1 = arith.constant 0 : i32
    return %c0_i32, %c0_i32_0 : i32, i32
  }
  func.func @transform_5(%arg0: i32) -> (i32, i32, i32) {
    %c0_i32 = arith.constant 0 : i32
    %c0_i32_0 = arith.constant 0 : i32
    %c0_i32_1 = arith.constant 0 : i32
    %c0_i32_2 = arith.constant 0 : i32
    return %c0_i32, %c0_i32_0, %c0_i32_1 : i32, i32, i32
  }
  func.func @transform_6(%arg0: i32) -> (i32, i32) {
    %c0_i32 = arith.constant 0 : i32
    %c0_i32_0 = arith.constant 0 : i32
    %c0_i32_1 = arith.constant 0 : i32
    return %c0_i32, %c0_i32_0 : i32, i32
  }
  func.func @transform_7(%arg0: i32) -> (i32, i32, i32) {
    %c0_i32 = arith.constant 0 : i32
    %c0_i32_0 = arith.constant 0 : i32
    %c0_i32_1 = arith.constant 0 : i32
    return %arg0, %c0_i32, %c0_i32_0 : i32, i32, i32
  }
}

</mosaic_0001>

<bundles_post_ra>
// kernel: tpu_custom_call.1
= control target key start
LH: loop header
LB: loop body
LE: loop exit
PB: predicated region body
PF: predicated region fallthrough
CT: control target
= control target key end

     0   :  { %12 = vsyncpa [#allocation3], 0  ;;  %s5208_s0 = inlined_call_operand.vmem [shape: f32[2,8,4], index: 0, kind: input, shape index: {}]   ;;  %s5209_s1 = inlined_call_operand.vmem [shape: f32[2,8,8,4], index: 1, kind: input, shape index: {}]   ;;  %s5210_s2 = inlined_call_operand.vmem [shape: f32[4,32], index: 2, kind: input, shape index: {}]   ;;  %s5211_s3 = inlined_call_operand.vmem [shape: f32[4,32], index: 3, kind: input, shape index: {}]   ;;  %s5212_s4 = inlined_call_operand.vmem [shape: f32[4,32], index: 4, kind: input, shape index: {}]   ;;  %s5213_s5 = inlined_call_operand.hbm [shape: f32[8,32,32], index: 5, kind: input, shape index: {}]   ;;  %s5214_s6 = inlined_call_operand.vmem [shape: f32[1,32], index: 6, kind: input, shape index: {}]   ;;  %s5215_s7 = inlined_call_operand.hbm [shape: f32[2,1,32], index: 7, kind: output, shape index: {}]  }
   0x1   :  { %13 = vsyncpa [#allocation4], 0  ;;  %s4572_s24 = smov [#allocation2]   ;;  %s4524_s28 = scalar_lea.hbm %s5213_s5, 4096 }
   0x2   :  { %s29_s25 = sshll.u32 %s4572_s24, 4  ;;  %p4525_p0 = scmp.ne.s32.totalorder %s5213_s5, %s4524_s28  ;;  %s30_s25 = int_to_ptr.vmem [resolvable:$true] %s29_s25 }
   0x3   :  { %p4528_p1 = scmp.lt.u32.totalorder %s4524_s28, %s5213_s5 }
   0x5   :  { %p4530_p2 = pnand %p4528_p1, %p4525_p0 }
   0x7   :  { %4533 = shalt.err (!%p4530_p2)
}
   0x8   :  { %s4534_s10 = scalar_lea.vmem %s30_s25, 4096  ;;  %p4539_p4 = scmp.lt.s32.totalorder %s30_s25, %s30_s25 }
   0x9   :  { %p4535_p3 = scmp.ne.s32.totalorder %s30_s25, %s4534_s10  ;;  %p4540_p5 = scmp.lt.s32.totalorder %s4534_s10, %s4534_s10 }
   0xb   :  { %p4541_p6 = por %p4540_p5, %p4539_p4 }
   0xd   :  { %p4542_p7 = pnand %p4541_p6, %p4535_p3 }
   0xf   :  { %4545 = shalt.err (!%p4542_p7)
}
  0x10   :  { %s4573_s11 = smov 128   ;;  %s4574_s12 = smov 8  }
  0x11   :  { %35 = dma.hbm_to_vmem [thread:$0]  %s5213_s5, 4096, %s30_s25, [#allocation3], %s4573_s11, %s4573_s11, %s4574_s12  }
  0x12   :  { %4568 = dma.done.wait [#allocation3], 4096  }
  0x13   :  { %4569 = vsyncadd [#allocation3], 4294963200  ;;  %vm109_vm0 = vcmask 1043456   ;;  %vm60_vm1 = vcmask 31744   ;;  %v59_v0 = vld [vmem:[%s5211_s3] sm:$0xf]  ;;  %v498_v44 = vlaneseq }
  0x14   :  { %v41_v1 = vld [vmem:[%s5209_s1] sm:$0xff]  ;;  %v42_v2 = vld [vmem:[%s5209_s1 + $0x8] sm:$0xff]  ;;  %4097 = vmatprep.subr.msk.mxu0 %vm109_vm0, %v59_v0  ;;  %v43_v4 = vld [vmem:[%s5209_s1 + $0x10] sm:$0xff]  ;;  %v4575_v21 = vmov 0.0   ;;  %vm4576_vm2 = vmmov 0   ;;  %vm592_vm3 = vcmask 261120  }
  0x15   :  { %4099 = vmatprep.mubr.msk.f32.mxu0 %vm60_vm1, %v41_v1  ;;  %v407_v3 = vld [vmem:[%s5210_s2] sm:$0xf]  ;;  %4098 = vmatpush3.msk.msra.mxu0 %vm109_vm0, %v59_v0  ;;  %v44_v5 = vld [vmem:[%s5209_s1 + $0x18] sm:$0xff]  ;;  %v46_v8 = vld [vmem:[%s5209_s1 + $0x28] sm:$0xff]  ;;  %v4577_v42 = vmov 1966171168  }
  0x16   :  { %4125 = vmatprep.mubr.msk.f32.mxu1 %vm60_vm1, %v41_v1  ;;  %4100 = vmatmul.mubr.msk.f32.vlgmr.msra.gmra.mrb[0].mxu0 %vm60_vm1, %v42_v2  ;;  %v45_v6 = vld [vmem:[%s5209_s1 + $0x20] sm:$0xff]  ;;  %v47_v9 = vld [vmem:[%s5209_s1 + $0x30] sm:$0xff]  ;;  %v48_v10 = vld [vmem:[%s5209_s1 + $0x38] sm:$0xff]  ;;  %v496_v43 = vunpack.c.l.s4 %v4577_v42  ;;  %v499_v50 = vshrl.u32 %v498_v44, 7  ;;  %vm1809_vm4 = vcmask 57344   ;;  %vm1986_vm5 = vcmask 64512  }
  0x17   :  { %4149 = vmatprep.subr.msk.mxu0 %vm109_vm0, %v407_v3  ;;  %4102 = vmatprep.mubr.msk.f32.mxu0 %vm60_vm1, %v43_v4  ;;  %v258_v7 = vld [vmem:[%s5212_s4] sm:$0xf]  ;;  %v50_v12 = vld [vmem:[%s5209_s1 + $0x48] sm:$0xff]  ;;  %v51_v13 = vld [vmem:[%s5209_s1 + $0x50] sm:$0xff]  ;;  %vm3167_vm6 = vcmask 1041409   ;;  %vm3842_vm7 = vcmask 253952  }
  0x18   :  { %4150 = vmatpush3.msk.msra.mxu0 %vm109_vm0, %v407_v3  ;;  %4123 = vmatprep.subr.msk.mxu1 %vm109_vm0, %v258_v7  ;;  %v49_v11 = vld [vmem:[%s5209_s1 + $0x40] sm:$0xff]  ;;  %v52_v14 = vld [vmem:[%s5209_s1 + $0x58] sm:$0xff]  ;;  %v54_v16 = vld [vmem:[%s5209_s1 + $0x68] sm:$0xff]  ;;  %v497_v49 = vunpack.c.0.s8 %v496_v43  ;;  %s4579_s27 = smov [#allocation5]  }
  0x19   :  { %4124 = vmatpush3.msk.msra.mxu1 %vm109_vm0, %v258_v7  ;;  %v53_v15 = vld [vmem:[%s5209_s1 + $0x60] sm:$0xff]  ;;  %v55_v17 = vld [vmem:[%s5209_s1 + $0x70] sm:$0xff]  ;;  %v56_v18 = vld [vmem:[%s5209_s1 + $0x78] sm:$0xff]  ;;  %4159 = vmatprep.subr.mxu0 %v4575_v21  ;;  %s3850_s28 = sshll.u32 %s4579_s27, 4  ;;  %s3851_s28 = int_to_ptr.vmem [resolvable:$true] %s3850_s28 }
  0x1a   :  { %4103 = vmatmul.mubr.msk.f32.gmra.mrb[2].mxu0 %vm60_vm1, %v44_v5  ;;  %4126 = vmatmul.mubr.msk.f32.vlgmr.msra.gmra.mrb[0].mxu1 %vm60_vm1, %v42_v2  ;;  %v57_v19 = vld [vmem:[%s5208_s0] sm:$0xff]  ;;  %v58_v20 = vld [vmem:[%s5208_s0 + $0x8] sm:$0xff]  ;;  %v4789_v55 = vsub.s32 %v497_v49, %v499_v50  ;;  %s4546_s29 = scalar_lea.vmem %s3851_s28, 32  ;;  %p4551_p9 = scmp.lt.s32.totalorder %s3851_s28, %s3851_s28 }
  0x1b   :  { %4105 = vmatprep.mubr.msk.f32.mxu0 %vm60_vm1, %v45_v6  ;;  %4128 = vmatprep.mubr.msk.f32.mxu1 %vm60_vm1, %v43_v4  ;;  %p4547_p8 = scmp.ne.s32.totalorder %s3851_s28, %s4546_s29  ;;  %p4552_p10 = scmp.lt.s32.totalorder %s4546_s29, %s4546_s29 }
  0x1c   :  { %4154 = vmatprep.subr.mxu1 %v4575_v21 }
  0x1d   :  { %p4553_p11 = por %p4552_p10, %p4551_p9 }
  0x1e   :  { %4106 = vmatmul.mubr.msk.f32.gmra.mrb[4].mxu0 %vm60_vm1, %v46_v8  ;;  %4129 = vmatmul.mubr.msk.f32.gmra.mrb[2].mxu1 %vm60_vm1, %v44_v5 }
  0x1f   :  { %4108 = vmatprep.mubr.msk.f32.mxu0 %vm60_vm1, %v47_v9  ;;  %4131 = vmatprep.mubr.msk.f32.mxu1 %vm60_vm1, %v45_v6  ;;  %p4554_p12 = pnand %p4553_p11, %p4547_p8 }
  0x22   :  { %4109 = vmatmul.mubr.msk.f32.gmra.mrb[6].mxu0 %vm60_vm1, %v48_v10  ;;  %4132 = vmatmul.mubr.msk.f32.gmra.mrb[4].mxu1 %vm60_vm1, %v46_v8 }
  0x23   :  { %4111 = vmatprep.mubr.msk.f32.mxu0 %vm60_vm1, %v49_v11  ;;  %4134 = vmatprep.mubr.msk.f32.mxu1 %vm60_vm1, %v47_v9 }
  0x26   :  { %4112 = vmatmul.mubr.msk.f32.gmra.mrb[8].mxu0 %vm60_vm1, %v50_v12  ;;  %4135 = vmatmul.mubr.msk.f32.gmra.mrb[6].mxu1 %vm60_vm1, %v48_v10 }
  0x27   :  { %4114 = vmatprep.mubr.msk.f32.mxu0 %vm60_vm1, %v51_v13  ;;  %4137 = vmatprep.mubr.msk.f32.mxu1 %vm60_vm1, %v49_v11 }
  0x2a   :  { %4115 = vmatmul.mubr.msk.f32.gmra.mrb[10].mxu0 %vm60_vm1, %v52_v14  ;;  %4138 = vmatmul.mubr.msk.f32.gmra.mrb[8].mxu1 %vm60_vm1, %v50_v12 }
  0x2b   :  { %4117 = vmatprep.mubr.msk.f32.mxu0 %vm60_vm1, %v53_v15  ;;  %4140 = vmatprep.mubr.msk.f32.mxu1 %vm60_vm1, %v51_v13 }
  0x2e   :  { %4118 = vmatmul.mubr.msk.f32.gmra.mrb[12].mxu0 %vm60_vm1, %v54_v16  ;;  %4141 = vmatmul.mubr.msk.f32.gmra.mrb[10].mxu1 %vm60_vm1, %v52_v14 }
  0x2f   :  { %4120 = vmatprep.mubr.msk.f32.mxu0 %vm60_vm1, %v55_v17  ;;  %4143 = vmatprep.mubr.msk.f32.mxu1 %vm60_vm1, %v53_v15 }
  0x32   :  { %4121 = vmatmul.mubr.msk.f32.gmra.mrb[14].mxu0 %vm60_vm1, %v56_v18  ;;  %4144 = vmatmul.mubr.msk.f32.gmra.mrb[12].mxu1 %vm60_vm1, %v54_v16 }
  0x33   :  { %4151 = vmatprep.mubr.msk.f32.mxu0 %vm60_vm1, %v57_v19  ;;  %4146 = vmatprep.mubr.msk.f32.mxu1 %vm60_vm1, %v55_v17 }
  0x36   :  { %4152 = vmatmul.mubr.msk.f32.vlgmr.msra.gmra.mrb[16].mxu0 %vm60_vm1, %v58_v20  ;;  %4147 = vmatmul.mubr.msk.f32.gmra.mrb[14].mxu1 %vm60_vm1, %v56_v18 }
  0x37   :  { %4156 = vmatprep.mubr.msk.f32.mxu1 %vm4576_vm2, %v4575_v21  ;;  %4161 = vmatprep.mubr.msk.f32.mxu0 %vm4576_vm2, %v4575_v21 }
  0xe9   :  { %v4101_v22 = vpop.f32.mrb[0].mxu0 }
  0xea   :  { %v179_v23 = vpop.f32.mrb[1].mxu0  ;;  %4160 = vmatpush3.xpose.msk.msra.mxu0 %vm592_vm3, %v4101_v22 }
  0xeb   :  { %4155 = vmatpush3.xpose.msk.msra.mxu1 %vm592_vm3, %v179_v23  ;;  %4169 = vmatprep.subr.mxu0 %v4575_v21 }
  0xec   :  { %4164 = vmatprep.subr.mxu1 %v4575_v21 }
  0xed   :  { %v4104_v24 = vpop.f32.mrb[2].mxu0  ;;  %v4747_v26 = vpop.f32.mrb[0].mxu1 }
  0xee   :  { %v189_v25 = vpop.f32.mrb[3].mxu0  ;;  %v4749_v27 = vpop.f32.mrb[1].mxu1 }
  0xf1   :  { %v4107_v28 = vpop.f32.mrb[4].mxu0  ;;  %v4751_v30 = vpop.f32.mrb[2].mxu1 }
  0xf2   :  { %v199_v29 = vpop.f32.mrb[5].mxu0  ;;  %v4753_v31 = vpop.f32.mrb[3].mxu1 }
  0xf5   :  { %v4755_v32 = vpop.f32.mrb[6].mxu0  ;;  %v4757_v34 = vpop.f32.mrb[4].mxu1 }
  0xf6   :  { %v209_v33 = vpop.f32.mrb[7].mxu0  ;;  %v4759_v35 = vpop.f32.mrb[5].mxu1 }
  0xf9   :  { %v4761_v36 = vpop.f32.mrb[8].mxu0  ;;  %v4765_v38 = vpop.f32.mrb[6].mxu1 }
  0xfa   :  { %v4763_v37 = vpop.f32.mrb[9].mxu0  ;;  %v4767_v39 = vpop.f32.mrb[7].mxu1 }
  0xfd   :  { %v4769_v40 = vpop.f32.mrb[10].mxu0  ;;  %v4773_v45 = vpop.f32.mrb[8].mxu1 }
  0xfe   :  { %v4771_v41 = vpop.f32.mrb[11].mxu0  ;;  %v4775_v46 = vpop.f32.mrb[9].mxu1 }
 0x101   :  { %v4777_v47 = vpop.f32.mrb[12].mxu0  ;;  %v4781_v51 = vpop.f32.mrb[10].mxu1 }
 0x102   :  { %v4779_v48 = vpop.f32.mrb[13].mxu0  ;;  %v4783_v52 = vpop.f32.mrb[11].mxu1 }
 0x105   :  { %v4785_v53 = vpop.f32.mrb[14].mxu0  ;;  %v4791_v56 = vpop.f32.mrb[12].mxu1 }
 0x106   :  { %v4787_v54 = vpop.f32.mrb[15].mxu0  ;;  %v4793_v57 = vpop.f32.mrb[13].mxu1 }
 0x109   :  { %v4153_v58 = vpop.f32.mrb[16].mxu0  ;;  %v4796_v62 = vpop.f32.mrb[14].mxu1 }
 0x10a   :  { %v483_v59 = vpop.f32.mrb[17].mxu0  ;;  %v4798_v63 = vpop.f32.mrb[15].mxu1  ;;  %v550_v8 = vrot.slane %v4153_v58, %v4789_v55  ;;  %v543_v11 = vcombine.high %v4153_v58, %v4153_v58 }
 0x10b   :  { %v494_v60 = vcombine.high %v483_v59, %v483_v59  ;;  %v501_v61 = vrot.slane %v483_v59, %v4789_v55 }
 0x10c   :  { %v558_v12 = vcombine.high %v550_v8, %v550_v8  ;;  %v566_v14 = vrot.slane %v550_v8, %v4789_v55  ;;  %v557_v15 = vrot.slane %v543_v11, %v4789_v55 }
 0x10d   :  { %v509_v0 = vcombine.high %v501_v61, %v501_v61  ;;  %v517_v1 = vrot.slane %v501_v61, %v4789_v55  ;;  %v508_v2 = vrot.slane %v494_v60, %v4789_v55 }
 0x10e   :  { %v580_v16 = vrot.slane %v558_v12, %v4789_v55  ;;  %v588_v17 = vcombine.high %v566_v14, %v566_v14  ;;  %v559_v18 = vcombine.high %v557_v15, %v557_v15  ;;  %v573_v20 = vrot.slane %v557_v15, %v4789_v55 }
 0x10f   :  { %v531_v3 = vrot.slane %v509_v0, %v4789_v55  ;;  %4157 = vmatmul.mubr.msk.f32.vlgmr.msra.gmra.mrb[16].mxu1 %vm592_vm3, %v517_v1  ;;  %v539_v4 = vcombine.high %v517_v1, %v517_v1  ;;  %v510_v5 = vcombine.high %v508_v2, %v508_v2  ;;  %v524_v7 = vrot.slane %v508_v2, %v4789_v55 }
 0x110   :  { %4165 = vmatpush3.xpose.msk.msra.mxu1 %vm592_vm3, %v189_v25  ;;  %4166 = vmatprep.mubr.msk.f32.mxu1 %vm4576_vm2, %v4575_v21  ;;  %v590_v19 = vcombine.high %v580_v16, %v580_v16  ;;  %v587_v22 = vrot.slane %v559_v18, %v4789_v55  ;;  %v589_v23 = vcombine.high %v573_v20, %v573_v20 }
 0x111   :  { %4162 = vmatmul.mubr.msk.f32.vlgmr.msra.gmra.mrb[18].mxu0 %vm592_vm3, %v531_v3  ;;  %4174 = vmatprep.subr.mxu1 %v4575_v21  ;;  %v541_v6 = vcombine.high %v531_v3, %v531_v3  ;;  %v538_v9 = vrot.slane %v510_v5, %v4789_v55  ;;  %v540_v10 = vcombine.high %v524_v7, %v524_v7 }
 0x112   :  { %4170 = vmatpush3.xpose.msk.msra.mxu0 %vm592_vm3, %v4104_v24  ;;  %4171 = vmatprep.mubr.msk.f32.mxu0 %vm4576_vm2, %v4575_v21  ;;  %v591_v24 = vcombine.high %v587_v22, %v587_v22 }
 0x113   :  { %4167 = vmatmul.mubr.msk.f32.vlgmr.msra.gmra.mrb[18].mxu1 %vm592_vm3, %v539_v4  ;;  %4179 = vmatprep.subr.mxu0 %v4575_v21  ;;  %v542_v13 = vcombine.high %v538_v9, %v538_v9 }
 0x114   :  { %4175 = vmatpush3.xpose.msk.msra.mxu1 %vm592_vm3, %v199_v29  ;;  %4176 = vmatprep.mubr.msk.f32.mxu1 %vm4576_vm2, %v4575_v21 }
 0x115   :  { %4172 = vmatmul.mubr.msk.f32.vlgmr.msra.gmra.mrb[20].mxu0 %vm592_vm3, %v541_v6  ;;  %4184 = vmatprep.subr.mxu1 %v4575_v21 }
 0x116   :  { %4180 = vmatpush3.xpose.msk.msra.mxu0 %vm592_vm3, %v4107_v28  ;;  %4181 = vmatprep.mubr.msk.f32.mxu0 %vm4576_vm2, %v4575_v21 }
 0x117   :  { %4177 = vmatmul.mubr.msk.f32.vlgmr.msra.gmra.mrb[20].mxu1 %vm592_vm3, %v524_v7  ;;  %4189 = vmatprep.subr.mxu0 %v4575_v21 }
 0x118   :  { %4185 = vmatpush3.xpose.msk.msra.mxu1 %vm592_vm3, %v209_v33  ;;  %4186 = vmatprep.mubr.msk.f32.mxu1 %vm4576_vm2, %v4575_v21 }
 0x119   :  { %4182 = vmatmul.mubr.msk.f32.vlgmr.msra.gmra.mrb[22].mxu0 %vm592_vm3, %v538_v9  ;;  %4194 = vmatprep.subr.mxu1 %v4575_v21 }
 0x11a   :  { %4190 = vmatpush3.xpose.msk.msra.mxu0 %vm592_vm3, %v4755_v32  ;;  %4191 = vmatprep.mubr.msk.f32.mxu0 %vm4576_vm2, %v4575_v21 }
 0x11b   :  { %4187 = vmatmul.mubr.msk.f32.vlgmr.msra.gmra.mrb[22].mxu1 %vm592_vm3, %v540_v10  ;;  %4199 = vmatprep.subr.mxu0 %v4575_v21 }
 0x11c   :  { %4195 = vmatpush3.xpose.msk.msra.mxu1 %vm592_vm3, %v4763_v37  ;;  %4196 = vmatprep.mubr.msk.f32.mxu1 %vm4576_vm2, %v4575_v21 }
 0x11d   :  { %4192 = vmatmul.mubr.msk.f32.vlgmr.msra.gmra.mrb[24].mxu0 %vm592_vm3, %v542_v13  ;;  %4204 = vmatprep.subr.mxu1 %v4575_v21 }
 0x11e   :  { %4200 = vmatpush3.xpose.msk.msra.mxu0 %vm592_vm3, %v4761_v36  ;;  %4201 = vmatprep.mubr.msk.f32.mxu0 %vm4576_vm2, %v4575_v21 }
 0x11f   :  { %4197 = vmatmul.mubr.msk.f32.vlgmr.msra.gmra.mrb[24].mxu1 %vm592_vm3, %v566_v14  ;;  %4209 = vmatprep.subr.mxu0 %v4575_v21 }
 0x120   :  { %4205 = vmatpush3.xpose.msk.msra.mxu1 %vm592_vm3, %v4771_v41  ;;  %4206 = vmatprep.mubr.msk.f32.mxu1 %vm4576_vm2, %v4575_v21 }
 0x121   :  { %4202 = vmatmul.mubr.msk.f32.vlgmr.msra.gmra.mrb[26].mxu0 %vm592_vm3, %v580_v16  ;;  %4214 = vmatprep.subr.mxu1 %v4575_v21 }
 0x122   :  { %4210 = vmatpush3.xpose.msk.msra.mxu0 %vm592_vm3, %v4769_v40  ;;  %4211 = vmatprep.mubr.msk.f32.mxu0 %vm4576_vm2, %v4575_v21 }
 0x123   :  { %4207 = vmatmul.mubr.msk.f32.vlgmr.msra.gmra.mrb[26].mxu1 %vm592_vm3, %v588_v17  ;;  %4219 = vmatprep.subr.mxu0 %v4575_v21 }
 0x124   :  { %4215 = vmatpush3.xpose.msk.msra.mxu1 %vm592_vm3, %v4779_v48  ;;  %4216 = vmatprep.mubr.msk.f32.mxu1 %vm4576_vm2, %v4575_v21 }
 0x125   :  { %4212 = vmatmul.mubr.msk.f32.vlgmr.msra.gmra.mrb[28].mxu0 %vm592_vm3, %v590_v19  ;;  %4224 = vmatprep.subr.mxu1 %v4575_v21 }
 0x126   :  { %4220 = vmatpush3.xpose.msk.msra.mxu0 %vm592_vm3, %v4777_v47  ;;  %4221 = vmatprep.mubr.msk.f32.mxu0 %vm4576_vm2, %v4575_v21 }
 0x127   :  { %4217 = vmatmul.mubr.msk.f32.vlgmr.msra.gmra.mrb[28].mxu1 %vm592_vm3, %v573_v20  ;;  %4229 = vmatprep.subr.mxu0 %v4575_v21 }
 0x128   :  { %4225 = vmatpush3.xpose.msk.msra.mxu1 %vm592_vm3, %v4787_v54  ;;  %4226 = vmatprep.mubr.msk.f32.mxu1 %vm4576_vm2, %v4575_v21 }
 0x129   :  { %4222 = vmatmul.mubr.msk.f32.vlgmr.msra.gmra.mrb[30].mxu0 %vm592_vm3, %v587_v22  ;;  %4234 = vmatprep.subr.mxu1 %v4575_v21 }
 0x12a   :  { %4230 = vmatpush3.xpose.msk.msra.mxu0 %vm592_vm3, %v4785_v53  ;;  %4231 = vmatprep.mubr.msk.f32.mxu0 %vm4576_vm2, %v4575_v21 }
 0x12b   :  { %4227 = vmatmul.mubr.msk.f32.vlgmr.msra.gmra.mrb[30].mxu1 %vm592_vm3, %v589_v23  ;;  %4239 = vmatprep.subr.mxu0 %v4575_v21 }
 0x12c   :  { %4235 = vmatpush3.msra.mxu1 %v4749_v27  ;;  %4236 = vmatprep.mubr.msk.f32.mxu1 %vm4576_vm2, %v4575_v21 }
 0x12d   :  { %4232 = vmatmul.mubr.msk.f32.vlgmr.msra.gmra.mrb[32].mxu0 %vm592_vm3, %v591_v24  ;;  %4244 = vmatprep.subr.mxu1 %v4575_v21 }
 0x12e   :  { %4240 = vmatpush3.msra.mxu0 %v4747_v26  ;;  %4241 = vmatprep.mubr.msk.f32.mxu0 %vm4576_vm2, %v4575_v21 }
 0x12f   :  { %4249 = vmatprep.subr.mxu0 %v4575_v21 }
 0x1e2   :  { %v664_v25 = vpop.f32.mrb[16].mxu1 }
 0x1e3   :  { %v4158_v28 = vpop.f32.mrb[17].mxu1  ;;  %v4902_v36 = vmul.f32 0.5, %v664_v25 }
 0x1e4   :  { %v739_v29 = vpop.f32.mrb[18].mxu0 }
 0x1e5   :  { %v4900_v32 = vmul.f32 0.5, %v739_v29  ;;  %v4163_v27 = vpop.f32.mrb[19].mxu0  ;;  %v1810_v48 = vsel %vm1809_vm4, %v4902_v36, -inf }
 0x1e6   :  { %v814_v33 = vpop.f32.mrb[18].mxu1 }
 0x1e7   :  { %v4168_v37 = vpop.f32.mrb[19].mxu1  ;;  %v1813_v40 = vsel %vm1809_vm4, %v4900_v32, -inf  ;;  %v4908_v44 = vmul.f32 0.5, %v814_v33 }
 0x1e8   :  { %1814 = vmax.xlane.f32.xlu0 %v1813_v40  ;;  %v889_v26 = vpop.f32.mrb[20].mxu0 }
 0x1e9   :  { %v4906_v41 = vmul.f32 0.5, %v889_v26  ;;  %v4173_v42 = vpop.f32.mrb[21].mxu0  ;;  %v1816_v61 = vsel %vm1809_vm4, %v4908_v44, -inf }
 0x1ea   :  { %v964_v43 = vpop.f32.mrb[20].mxu1 }
 0x1eb   :  { %v4178_v47 = vpop.f32.mrb[21].mxu1  ;;  %v1819_v49 = vsel %vm1809_vm4, %v4906_v41, -inf  ;;  %v4916_v59 = vmul.f32 0.5, %v964_v43 }
 0x1ec   :  { %1811 = vmax.xlane.f32.xlu0 %v1810_v48  ;;  %1820 = vmax.xlane.f32.xlu1 %v1819_v49  ;;  %v1039_v50 = vpop.f32.mrb[22].mxu0 }
 0x1ed   :  { %v4914_v53 = vmul.f32 0.5, %v1039_v50  ;;  %v4183_v54 = vpop.f32.mrb[23].mxu0  ;;  %v1822_v7 = vsel %vm1809_vm4, %v4916_v59, -inf }
 0x1ee   :  { %v1114_v58 = vpop.f32.mrb[22].mxu1 }
 0x1ef   :  { %v4188_v60 = vpop.f32.mrb[23].mxu1  ;;  %v1825_v0 = vsel %vm1809_vm4, %v4914_v53, -inf  ;;  %v4924_v5 = vmul.f32 0.5, %v1114_v58 }
 0x1f0   :  { %1817 = vmax.xlane.f32.xlu1 %v1816_v61  ;;  %1826 = vmax.xlane.f32.xlu0 %v1825_v0  ;;  %v1189_v1 = vpop.f32.mrb[24].mxu0 }
 0x1f1   :  { %v4922_v2 = vmul.f32 0.5, %v1189_v1  ;;  %v4193_v3 = vpop.f32.mrb[25].mxu0  ;;  %v1828_v16 = vsel %vm1809_vm4, %v4924_v5, -inf }
 0x1f2   :  { %v1264_v4 = vpop.f32.mrb[24].mxu1 }
 0x1f3   :  { %v4198_v6 = vpop.f32.mrb[25].mxu1  ;;  %v1831_v8 = vsel %vm1809_vm4, %v4922_v2, -inf  ;;  %v4932_v13 = vmul.f32 0.5, %v1264_v4 }
 0x1f4   :  { %1823 = vmax.xlane.f32.xlu1 %v1822_v7  ;;  %1832 = vmax.xlane.f32.xlu0 %v1831_v8  ;;  %v1339_v9 = vpop.f32.mrb[26].mxu0 }
 0x1f5   :  { %v4930_v10 = vmul.f32 0.5, %v1339_v9  ;;  %v4203_v11 = vpop.f32.mrb[27].mxu0  ;;  %v1834_v25 = vsel %vm1809_vm4, %v4932_v13, -inf }
 0x1f6   :  { %v1414_v12 = vpop.f32.mrb[26].mxu1 }
 0x1f7   :  { %v4934_v14 = vmul.f32 0.5, %v1414_v12  ;;  %v4208_v15 = vpop.f32.mrb[27].mxu1  ;;  %v1837_v17 = vsel %vm1809_vm4, %v4930_v10, -inf }
 0x1f8   :  { %1829 = vmax.xlane.f32.xlu1 %v1828_v16  ;;  %1838 = vmax.xlane.f32.xlu0 %v1837_v17  ;;  %v1489_v18 = vpop.f32.mrb[28].mxu0 }
 0x1f9   :  { %v4213_v19 = vpop.f32.mrb[29].mxu0  ;;  %v4940_v22 = vmul.f32 0.5, %v1489_v18  ;;  %v1840_v28 = vsel %vm1809_vm4, %v4934_v14, -inf }
 0x1fa   :  { %v1564_v20 = vpop.f32.mrb[28].mxu1 }
 0x1fb   :  { %v4942_v23 = vmul.f32 0.5, %v1564_v20  ;;  %v4218_v24 = vpop.f32.mrb[29].mxu1  ;;  %v1843_v43 = vsel %vm1809_vm4, %v4940_v22, -inf }
 0x1fc   :  { %1835 = vmax.xlane.f32.xlu1 %v1834_v25  ;;  %1841 = vmax.xlane.f32.xlu0 %v1840_v28  ;;  %v1639_v29 = vpop.f32.mrb[30].mxu0 }
 0x1fd   :  { %v4223_v27 = vpop.f32.mrb[31].mxu0  ;;  %v4948_v37 = vmul.f32 0.5, %v1639_v29  ;;  %v1846_v42 = vsel %vm1809_vm4, %v4942_v23, -inf }
 0x1fe   :  { %v1714_v33 = vpop.f32.mrb[30].mxu1 }
 0x1ff   :  { %v4950_v40 = vmul.f32 0.5, %v1714_v33  ;;  %v4228_v26 = vpop.f32.mrb[31].mxu1  ;;  %v1849_v54 = vsel %vm1809_vm4, %v4948_v37, -inf }
 0x200   :  { %1847 = vmax.xlane.f32.xlu0 %v1846_v42  ;;  %1844 = vmax.xlane.f32.xlu1 %v1843_v43  ;;  %v1789_v47 = vpop.f32.mrb[32].mxu0 }
 0x201   :  { %v4233_v48 = vpop.f32.mrb[33].mxu0  ;;  %v4956_v49 = vmul.f32 0.5, %v1789_v47  ;;  %v1852_v50 = vsel %vm1809_vm4, %v4950_v40, -inf }
 0x203   :  { %v1855_v58 = vsel %vm1809_vm4, %v4956_v49, -inf }
 0x204   :  { %1853 = vmax.xlane.f32.xlu0 %v1852_v50  ;;  %1850 = vmax.xlane.f32.xlu1 %v1849_v54 }
 0x208   :  { %1856 = vmax.xlane.f32.xlu1 %v1855_v58 }
 0x275   :  { %v1815_v60 = vpop.xlane.xlu0 %1814 }
 0x276   :  { %v1859_v61 = vsub.f32 %v4900_v32, %v1815_v60 }
 0x278   :  { %v1876_v0 = vmul.f32 1.442695, %v1859_v61 }
 0x279   :  { %v1812_v1 = vpop.xlane.xlu0 %1811  ;;  %v1821_v3 = vpop.xlane.xlu1 %1820 }
 0x27a   :  { %4460 = vpow2.f32 %v1876_v0  ;;  %v1858_v4 = vsub.f32 %v4902_v36, %v1812_v1  ;;  %v1861_v6 = vsub.f32 %v4906_v41, %v1821_v3 }
 0x27c   :  { %v1874_v7 = vmul.f32 1.442695, %v1858_v4  ;;  %v1880_v8 = vmul.f32 1.442695, %v1861_v6 }
 0x27d   :  { %v1818_v9 = vpop.xlane.xlu1 %1817  ;;  %v1827_v11 = vpop.xlane.xlu0 %1826 }
 0x27e   :  { %4462 = vpow2.f32 %v1874_v7  ;;  %v1860_v12 = vsub.f32 %v4908_v44, %v1818_v9  ;;  %v1863_v15 = vsub.f32 %v4914_v53, %v1827_v11 }
 0x27f   :  { %4464 = vpow2.f32 %v1880_v8 }
 0x280   :  { %v1878_v16 = vmul.f32 1.442695, %v1860_v12  ;;  %v1884_v32 = vmul.f32 1.442695, %v1863_v15 }
 0x281   :  { %v1824_v17 = vpop.xlane.xlu1 %1823  ;;  %v1833_v18 = vpop.xlane.xlu0 %1832 }
 0x282   :  { %4466 = vpow2.f32 %v1878_v16  ;;  %v1862_v19 = vsub.f32 %v4916_v59, %v1824_v17  ;;  %v1865_v36 = vsub.f32 %v4922_v2, %v1833_v18 }
 0x283   :  { %4468 = vpow2.f32 %v1884_v32 }
 0x284   :  { %v4971_v41 = vpop.eup %4460  ;;  %v1882_v20 = vmul.f32 1.442695, %v1862_v19  ;;  %v1888_v24 = vmul.f32 1.442695, %v1865_v36 }
 0x285   :  { %v1830_v25 = vpop.xlane.xlu1 %1829  ;;  %v1839_v28 = vpop.xlane.xlu0 %1838  ;;  %v1909_v44 = vsel %vm1809_vm4, %v4971_v41, 0.0 }
 0x286   :  { %4470 = vpow2.f32 %v1882_v20  ;;  %v1864_v53 = vsub.f32 %v4924_v5, %v1830_v25  ;;  %v1867_v29 = vsub.f32 %v4930_v10, %v1839_v28  ;;  %1910 = vadd.xlane.f32.xlu0 %v1909_v44 }
 0x287   :  { %4472 = vpow2.f32 %v1888_v24 }
 0x288   :  { %v4977_v59 = vpop.eup %4462  ;;  %v1886_v2 = vmul.f32 1.442695, %v1864_v53  ;;  %v1892_v27 = vmul.f32 1.442695, %v1867_v29 }
 0x289   :  { %v4979_v33 = vpop.eup %4464  ;;  %v1836_v26 = vpop.xlane.xlu1 %1835  ;;  %v1906_v43 = vsel %vm1809_vm4, %v4977_v59, 0.0 }
 0x28a   :  { %v1842_v42 = vpop.xlane.xlu0 %1841  ;;  %4474 = vpow2.f32 %v1886_v2  ;;  %v1866_v47 = vsub.f32 %v4932_v13, %v1836_v26  ;;  %v1915_v10 = vsel %vm1809_vm4, %v4979_v33, 0.0  ;;  %1907 = vadd.xlane.f32.xlu1 %v1906_v43 }
 0x28b   :  { %v1868_v5 = vsub.f32 %v4934_v14, %v1842_v42  ;;  %4476 = vpow2.f32 %v1892_v27  ;;  %1916 = vadd.xlane.f32.xlu0 %v1915_v10 }
 0x28c   :  { %v4987_v48 = vpop.eup %4466  ;;  %v1890_v50 = vmul.f32 1.442695, %v1866_v47 }
 0x28d   :  { %v1894_v54 = vmul.f32 1.442695, %v1868_v5  ;;  %v4989_v58 = vpop.eup %4468  ;;  %v1845_v61 = vpop.xlane.xlu1 %1844  ;;  %v1912_v0 = vsel %vm1809_vm4, %v4987_v48, 0.0 }
 0x28e   :  { %v1848_v60 = vpop.xlane.xlu0 %1847  ;;  %4478 = vpow2.f32 %v1890_v50  ;;  %v1869_v14 = vsub.f32 %v4940_v22, %v1845_v61  ;;  %v1921_v1 = vsel %vm1809_vm4, %v4989_v58, 0.0  ;;  %1913 = vadd.xlane.f32.xlu1 %v1912_v0 }
 0x28f   :  { %v1870_v13 = vsub.f32 %v4942_v23, %v1848_v60  ;;  %4480 = vpow2.f32 %v1894_v54  ;;  %1922 = vadd.xlane.f32.xlu0 %v1921_v1 }
 0x290   :  { %v4997_v3 = vpop.eup %4470  ;;  %v1896_v6 = vmul.f32 1.442695, %v1869_v14 }
 0x291   :  { %v1898_v4 = vmul.f32 1.442695, %v1870_v13  ;;  %v4999_v7 = vpop.eup %4472  ;;  %v1851_v9 = vpop.xlane.xlu1 %1850  ;;  %v1918_v11 = vsel %vm1809_vm4, %v4997_v3, 0.0 }
 0x292   :  { %v1854_v8 = vpop.xlane.xlu0 %1853  ;;  %v1871_v23 = vsub.f32 %v4948_v37, %v1851_v9  ;;  %v1927_v12 = vsel %vm1809_vm4, %v4999_v7, 0.0  ;;  %1919 = vadd.xlane.f32.xlu1 %v1918_v11 }
 0x293   :  { %4482 = vpow2.f32 %v1898_v4  ;;  %v1872_v22 = vsub.f32 %v4950_v40, %v1854_v8  ;;  %1928 = vadd.xlane.f32.xlu0 %v1927_v12 }
 0x294   :  { %4484 = vpow2.f32 %v1896_v6  ;;  %v5007_v15 = vpop.eup %4474  ;;  %v1900_v32 = vmul.f32 1.442695, %v1871_v23 }
 0x295   :  { %v1902_v16 = vmul.f32 1.442695, %v1872_v22  ;;  %v5009_v17 = vpop.eup %4476  ;;  %v1857_v18 = vpop.xlane.xlu1 %1856  ;;  %v1924_v19 = vsel %vm1809_vm4, %v5007_v15, 0.0 }
 0x296   :  { %v1873_v40 = vsub.f32 %v4956_v49, %v1857_v18  ;;  %v1933_v37 = vsel %vm1809_vm4, %v5009_v17, 0.0  ;;  %1925 = vadd.xlane.f32.xlu1 %v1924_v19 }
 0x297   :  { %4486 = vpow2.f32 %v1902_v16  ;;  %1934 = vadd.xlane.f32.xlu0 %v1933_v37 }
 0x298   :  { %4488 = vpow2.f32 %v1900_v32  ;;  %v5016_v36 = vpop.eup %4478  ;;  %v1904_v20 = vmul.f32 1.442695, %v1873_v40 }
 0x299   :  { %v5018_v24 = vpop.eup %4480  ;;  %v1930_v25 = vsel %vm1809_vm4, %v5016_v36, 0.0 }
 0x29a   :  { %4490 = vpow2.f32 %v1904_v20  ;;  %v1936_v28 = vsel %vm1809_vm4, %v5018_v24, 0.0  ;;  %1931 = vadd.xlane.f32.xlu1 %v1930_v25  ;;  %v3160_v25 = vld [vmem:[#allocation2 + $0x20] sm:$0xff] }
 0x29b   :  { %1937 = vadd.xlane.f32.xlu0 %v1936_v28 }
 0x29d   :  { %v5024_v49 = vpop.eup %4482 }
 0x29e   :  { %v5026_v44 = vpop.eup %4484  ;;  %v1942_v53 = vsel %vm1809_vm4, %v5024_v49, 0.0 }
 0x29f   :  { %v1939_v29 = vsel %vm1809_vm4, %v5026_v44, 0.0  ;;  %1943 = vadd.xlane.f32.xlu0 %v1942_v53  ;;  %v3155_v53 = vld [vmem:[#allocation2] sm:$0xff] }
 0x2a0   :  { %1940 = vadd.xlane.f32.xlu1 %v1939_v29 }
 0x2a1   :  { %v5032_v2 = vpop.eup %4486 }
 0x2a2   :  { %v5034_v27 = vpop.eup %4488  ;;  %v1948_v26 = vsel %vm1809_vm4, %v5032_v2, 0.0 }
 0x2a3   :  { %v1945_v42 = vsel %vm1809_vm4, %v5034_v27, 0.0  ;;  %1949 = vadd.xlane.f32.xlu0 %v1948_v26  ;;  %v3157_v26 = vld [vmem:[#allocation2 + $0x10] sm:$0xff] }
 0x2a4   :  { %1946 = vadd.xlane.f32.xlu1 %v1945_v42  ;;  %v5040_v43 = vpop.eup %4490  ;;  %v3158_v42 = vld [vmem:[#allocation2 + $0x18] sm:$0xff] }
 0x2a5   :  { %v1951_v47 = vsel %vm1809_vm4, %v5040_v43, 0.0 }
 0x2a8   :  { %1952 = vadd.xlane.f32.xlu1 %v1951_v47 }
 0x313   :  { %v1911_v5 = vpop.xlane.xlu0 %1910 }
 0x314   :  { %4492 = vrcp.f32 %v1911_v5 }
 0x317   :  { %v1908_v10 = vpop.xlane.xlu1 %1907 }
 0x318   :  { %v1917_v50 = vpop.xlane.xlu0 %1916  ;;  %4494 = vrcp.f32 %v1908_v10 }
 0x319   :  { %4496 = vrcp.f32 %v1917_v50 }
 0x31b   :  { %v1914_v54 = vpop.xlane.xlu1 %1913 }
 0x31c   :  { %v1923_v60 = vpop.xlane.xlu0 %1922  ;;  %4498 = vrcp.f32 %v1914_v54 }
 0x31d   :  { %4500 = vrcp.f32 %v1923_v60 }
 0x31e   :  { %v4493_v61 = vpop.eup %4492 }
 0x31f   :  { %v1971_v0 = vmul.f32 %v4493_v61, %v4971_v41  ;;  %v1920_v13 = vpop.xlane.xlu1 %1919 }
 0x320   :  { %v1929_v14 = vpop.xlane.xlu0 %1928  ;;  %4502 = vrcp.f32 %v1920_v13 }
 0x321   :  { %4504 = vrcp.f32 %v1929_v14  ;;  %4242 = vmatmul.mubr.msk.f32.vlgmr.msra.gmra.mrb[34].mxu0 %vm1986_vm5, %v1971_v0 }
 0x322   :  { %v4495_v1 = vpop.eup %4494  ;;  %4250 = vmatpush3.msra.mxu0 %v4751_v30  ;;  %4251 = vmatprep.mubr.msk.f32.mxu0 %vm4576_vm2, %v4575_v21 }
 0x323   :  { %v4497_v4 = vpop.eup %4496  ;;  %v1970_v6 = vmul.f32 %v4495_v1, %v4977_v59  ;;  %v1926_v8 = vpop.xlane.xlu1 %1925  ;;  %4259 = vmatprep.subr.mxu0 %v4575_v21 }
 0x324   :  { %v1973_v41 = vmul.f32 %v4497_v4, %v4979_v33  ;;  %v1935_v9 = vpop.xlane.xlu0 %1934  ;;  %4506 = vrcp.f32 %v1926_v8 }
 0x325   :  { %4508 = vrcp.f32 %v1935_v9  ;;  %4237 = vmatmul.mubr.msk.f32.vlgmr.msra.gmra.mrb[32].mxu1 %vm1986_vm5, %v1970_v6  ;;  %v3319_v9 = vld [vmem:[#allocation2 + $0x48] sm:$0xff] }
 0x326   :  { %v4499_v11 = vpop.eup %4498  ;;  %4245 = vmatpush3.msra.mxu1 %v4753_v31  ;;  %4252 = vmatmul.mubr.msk.f32.vlgmr.msra.gmra.mrb[36].mxu0 %vm1986_vm5, %v1973_v41  ;;  %v3318_v41 = vld [vmem:[#allocation2 + $0x40] sm:$0xff] }
 0x327   :  { %v4501_v30 = vpop.eup %4500  ;;  %v1972_v22 = vmul.f32 %v4499_v11, %v4987_v48  ;;  %4260 = vmatpush3.msra.mxu0 %v4757_v34  ;;  %v1932_v59 = vpop.xlane.xlu1 %1931  ;;  %4246 = vmatprep.mubr.msk.f32.mxu1 %vm4576_vm2, %v4575_v21 }
 0x328   :  { %v1975_v33 = vmul.f32 %v4501_v30, %v4989_v58  ;;  %v1938_v23 = vpop.xlane.xlu0 %1937  ;;  %4510 = vrcp.f32 %v1932_v59  ;;  %4254 = vmatprep.subr.mxu1 %v4575_v21  ;;  %4261 = vmatprep.mubr.msk.f32.mxu0 %vm4576_vm2, %v4575_v21 }
 0x329   :  { %4269 = vmatprep.subr.mxu0 %v4575_v21  ;;  %4247 = vmatmul.mubr.msk.f32.vlgmr.msra.gmra.mrb[34].mxu1 %vm1986_vm5, %v1972_v22  ;;  %4512 = vrcp.f32 %v1938_v23  ;;  %v4415_v23 = vpack.c.bf16 %v3319_v9, %v3318_v41 }
 0x32a   :  { %v4503_v31 = vpop.eup %4502  ;;  %4255 = vmatpush3.msra.mxu1 %v4759_v35  ;;  %4262 = vmatmul.mubr.msk.f32.vlgmr.msra.gmra.mrb[38].mxu0 %vm1986_vm5, %v1975_v33 }
 0x32b   :  { %v4505_v34 = vpop.eup %4504  ;;  %v1974_v48 = vmul.f32 %v4503_v31, %v4997_v3  ;;  %4270 = vmatpush3.msra.mxu0 %v4765_v38  ;;  %4256 = vmatprep.mubr.msk.f32.mxu1 %vm4576_vm2, %v4575_v21  ;;  %v3400_v31 = vld [vmem:[#allocation2 + $0x60] sm:$0xff] }
 0x32c   :  { %v1977_v58 = vmul.f32 %v4505_v34, %v4999_v7  ;;  %v1944_v12 = vpop.xlane.xlu0 %1943  ;;  %4264 = vmatprep.subr.mxu1 %v4575_v21  ;;  %4271 = vmatprep.mubr.msk.f32.mxu0 %vm4576_vm2, %v4575_v21  ;;  %v3401_v34 = vld [vmem:[#allocation2 + $0x68] sm:$0xff] }
 0x32d   :  { %v1941_v16 = vpop.xlane.xlu1 %1940  ;;  %4514 = vrcp.f32 %v1944_v12  ;;  %4279 = vmatprep.subr.mxu0 %v4575_v21  ;;  %4257 = vmatmul.mubr.msk.f32.vlgmr.msra.gmra.mrb[36].mxu1 %vm1986_vm5, %v1974_v48  ;;  %v3320_v48 = vld [vmem:[#allocation2 + $0x50] sm:$0xff] }
 0x32e   :  { %v4507_v35 = vpop.eup %4506  ;;  %4516 = vrcp.f32 %v1941_v16  ;;  %4265 = vmatpush3.msra.mxu1 %v4767_v39  ;;  %4272 = vmatmul.mubr.msk.f32.vlgmr.msra.gmra.mrb[40].mxu0 %vm1986_vm5, %v1977_v58  ;;  %v3321_v58 = vld [vmem:[#allocation2 + $0x58] sm:$0xff] }
 0x32f   :  { %v4509_v38 = vpop.eup %4508  ;;  %v1976_v3 = vmul.f32 %v4507_v35, %v5007_v15  ;;  %4280 = vmatpush3.msra.mxu0 %v4773_v45  ;;  %4266 = vmatprep.mubr.msk.f32.mxu1 %vm4576_vm2, %v4575_v21 }
 0x330   :  { %v1979_v7 = vmul.f32 %v4509_v38, %v5009_v17  ;;  %v1950_v32 = vpop.xlane.xlu0 %1949  ;;  %4274 = vmatprep.subr.mxu1 %v4575_v21  ;;  %4281 = vmatprep.mubr.msk.f32.mxu0 %vm4576_vm2, %v4575_v21 }
 0x331   :  { %v1947_v18 = vpop.xlane.xlu1 %1946  ;;  %4518 = vrcp.f32 %v1950_v32  ;;  %4289 = vmatprep.subr.mxu0 %v4575_v21  ;;  %4267 = vmatmul.mubr.msk.f32.vlgmr.msra.gmra.mrb[38].mxu1 %vm1986_vm5, %v1976_v3  ;;  %v4421_v3 = vpack.c.bf16 %v3401_v34, %v3400_v31  ;;  %v3402_v32 = vld [vmem:[#allocation2 + $0x70] sm:$0xff]  ;;  %v3731_v34 = vld [vmem:[#allocation2 + $0xf8] sm:$0xff] }
 0x332   :  { %v4511_v39 = vpop.eup %4510  ;;  %4520 = vrcp.f32 %v1947_v18  ;;  %4275 = vmatpush3.msra.mxu1 %v4775_v46  ;;  %4282 = vmatmul.mubr.msk.f32.vlgmr.msra.gmra.mrb[42].mxu0 %vm1986_vm5, %v1979_v7  ;;  %v4418_v7 = vpack.c.bf16 %v3321_v58, %v3320_v48  ;;  %v3403_v18 = vld [vmem:[#allocation2 + $0x78] sm:$0xff]  ;;  %v3730_v31 = vld [vmem:[#allocation2 + $0xf0] sm:$0xff] }
 0x333   :  { %v1978_v45 = vmul.f32 %v4511_v39, %v5016_v36  ;;  %4290 = vmatpush3.msra.mxu0 %v4781_v51  ;;  %4276 = vmatprep.mubr.msk.f32.mxu1 %vm4576_vm2, %v4575_v21  ;;  %v4513_v15 = vpop.eup %4512 }
 0x334   :  { %4284 = vmatprep.subr.mxu1 %v4575_v21  ;;  %4291 = vmatprep.mubr.msk.f32.mxu0 %vm4576_vm2, %v4575_v21  ;;  %v1980_v51 = vmul.f32 %v4513_v15, %v5018_v24  ;;  %v3483_v15 = vld [vmem:[#allocation2 + $0x88] sm:$0xff] }
 0x335   :  { %v1953_v17 = vpop.xlane.xlu1 %1952  ;;  %4277 = vmatmul.mubr.msk.f32.vlgmr.msra.gmra.mrb[40].mxu1 %vm1986_vm5, %v1978_v45  ;;  %4299 = vmatprep.subr.mxu0 %v4575_v21  ;;  %v3482_v45 = vld [vmem:[#allocation2 + $0x80] sm:$0xff] }
 0x336   :  { %4522 = vrcp.f32 %v1953_v17  ;;  %4285 = vmatpush3.msra.mxu1 %v4783_v52  ;;  %4286 = vmatprep.mubr.msk.f32.mxu1 %vm4576_vm2, %v4575_v21 }
 0x337   :  { %v4515_v46 = vpop.eup %4514  ;;  %4294 = vmatprep.subr.mxu1 %v4575_v21 }
 0x338   :  { %v4517_v19 = vpop.eup %4516  ;;  %v1982_v52 = vmul.f32 %v4515_v46, %v5024_v49  ;;  %v3162_v49 = vld [vmem:[#allocation2 + $0x30] sm:$0xff] }
 0x339   :  { %v1981_v40 = vmul.f32 %v4517_v19, %v5026_v44  ;;  %4287 = vmatmul.mubr.msk.f32.vlgmr.msra.gmra.mrb[42].mxu1 %vm1986_vm5, %v1980_v51  ;;  %v3163_v44 = vld [vmem:[#allocation2 + $0x38] sm:$0xff]  ;;  %v4424_v19 = vpack.c.bf16 %v3403_v18, %v3402_v32 }
 0x33a   :  { %4295 = vmatpush3.msra.mxu1 %v4793_v57  ;;  %4296 = vmatprep.mubr.msk.f32.mxu1 %vm4576_vm2, %v4575_v21  ;;  %v4406_v29 = vpack.c.bf16 %v3163_v44, %v3162_v49 }
 0x33b   :  { %v4519_v37 = vpop.eup %4518  ;;  %4292 = vmatmul.mubr.msk.f32.vlgmr.msra.gmra.mrb[44].mxu0 %vm1986_vm5, %v1981_v40  ;;  %4304 = vmatprep.subr.mxu1 %v4575_v21 }
 0x33c   :  { %v4521_v36 = vpop.eup %4520  ;;  %4300 = vmatpush3.msra.mxu0 %v4791_v56  ;;  %4301 = vmatprep.mubr.msk.f32.mxu0 %vm4576_vm2, %v4575_v21  ;;  %v1984_v24 = vmul.f32 %v4519_v37, %v5032_v2  ;;  %v3156_v2 = vld [vmem:[#allocation2 + $0x8] sm:$0xff]  ;;  %v4427_v37 = vpack.c.bf16 %v3483_v15, %v3482_v45 }
 0x33d   :  { %v1983_v20 = vmul.f32 %v4521_v36, %v5034_v27  ;;  %4309 = vmatprep.subr.mxu0 %v4575_v21  ;;  %4297 = vmatmul.mubr.msk.f32.vlgmr.msra.gmra.mrb[44].mxu1 %vm1986_vm5, %v1982_v52  ;;  %v4409_v27 = vpack.c.bf16 %v3156_v2, %v3155_v53  ;;  %v3564_v52 = vld [vmem:[#allocation2 + $0xa0] sm:$0xff]  ;;  %v3565_v36 = vld [vmem:[#allocation2 + $0xa8] sm:$0xff] }
 0x33e   :  { %4305 = vmatpush3.msra.mxu1 %v4798_v63  ;;  %4306 = vmatprep.mubr.msk.f32.mxu1 %vm4576_vm2, %v4575_v21  ;;  %v4578_v63 = vmov 0.0|0.0   ;;  %v4433_v53 = vpack.c.bf16 %v3565_v36, %v3564_v52 }
 0x33f   :  { %4302 = vmatmul.mubr.msk.f32.vlgmr.msra.gmra.mrb[46].mxu0 %vm1986_vm5, %v1983_v20  ;;  %4402 = vmatprep.subr.bf16.mxu1 %v4578_v63 }
 0x340   :  { %v4523_v57 = vpop.eup %4522  ;;  %4310 = vmatpush3.msra.mxu0 %v4796_v62  ;;  %4311 = vmatprep.mubr.msk.f32.mxu0 %vm4576_vm2, %v4575_v21  ;;  %v3161_v62 = vld [vmem:[#allocation2 + $0x28] sm:$0xff] }
 0x341   :  { %v1985_v56 = vmul.f32 %v4523_v57, %v5040_v43  ;;  %4307 = vmatmul.mubr.msk.f32.vlgmr.msra.gmra.mrb[46].mxu1 %vm1986_vm5, %v1984_v24  ;;  %4408 = vmatprep.subr.bf16.mxu0 %v4578_v63  ;;  %v4403_v28 = vpack.c.bf16 %v3161_v62, %v3160_v25  ;;  %v4412_v43 = vpack.c.bf16 %v3158_v42, %v3157_v26  ;;  %v3485_v25 = vld [vmem:[#allocation2 + $0x98] sm:$0xff] }
 0x342   :  { %4322 = vmatprep.mubr.msk.f32.mxu1 %vm4576_vm2, %v4575_v21  ;;  %v3567_v26 = vld [vmem:[#allocation2 + $0xb8] sm:$0xff] }
 0x343   :  { %4312 = vmatmul.mubr.msk.f32.vlgmr.msra.gmra.mrb[48].mxu0 %vm1986_vm5, %v1985_v56  ;;  %4404 = vmatpush3.bf16.msra.mxu1 %v4403_v28  ;;  %v3484_v56 = vld [vmem:[#allocation2 + $0x90] sm:$0xff] }
 0x344   :  { %4333 = vmatprep.mubr.msk.f32.mxu0 %vm4576_vm2, %v4575_v21  ;;  %4405 = vmatprep.subr.bf16.mxu1 %v4578_v63  ;;  %v4430_v2 = vpack.c.bf16 %v3485_v25, %v3484_v56 }
 0x345   :  { %4410 = vmatpush3.bf16.msra.mxu0 %v4409_v27  ;;  %v3566_v27 = vld [vmem:[#allocation2 + $0xb0] sm:$0xff] }
 0x346   :  { %4411 = vmatprep.subr.bf16.mxu0 %v4578_v63 }
 0x347   :  { %4407 = vmatpush3.bf16.msra.mxu1 %v4406_v29 }
 0x348   :  { %4414 = vmatprep.subr.bf16.mxu1 %v4578_v63 }
 0x349   :  { %4413 = vmatpush3.bf16.msra.mxu0 %v4412_v43 }
 0x34a   :  { %4420 = vmatprep.subr.bf16.mxu0 %v4578_v63 }
 0x3f4   :  { %v2129_v47 = vpop.f32.mrb[34].mxu0 }
 0x3f5   :  { %v4243_v5 = vpop.f32.mrb[35].mxu0 }
 0x3f6   :  { %v3646_v5 = vld [vmem:[#allocation2 + $0xc0] sm:$0xff] }
 0x3f8   :  { %v2056_v10 = vpop.f32.mrb[32].mxu1 }
 0x3f9   :  { %v2275_v50 = vpop.f32.mrb[36].mxu0  ;;  %v4238_v54 = vpop.f32.mrb[33].mxu1 }
 0x3fa   :  { %v4253_v60 = vpop.f32.mrb[37].mxu0 }
 0x3fc   :  { %v2202_v61 = vpop.f32.mrb[34].mxu1 }
 0x3fd   :  { %v5140_v0 = vpop.f32.mrb[38].mxu0  ;;  %v4248_v13 = vpop.f32.mrb[35].mxu1 }
 0x3fe   :  { %v4263_v14 = vpop.f32.mrb[39].mxu0  ;;  %v4436_v13 = vpack.c.bf16 %v3567_v26, %v3566_v27 }
 0x400   :  { %v5142_v1 = vpop.f32.mrb[36].mxu1 }
 0x401   :  { %v5144_v4 = vpop.f32.mrb[40].mxu0  ;;  %v4258_v6 = vpop.f32.mrb[37].mxu1 }
 0x402   :  { %v4273_v8 = vpop.f32.mrb[41].mxu0  ;;  %v3728_v6 = vld [vmem:[#allocation2 + $0xe0] sm:$0xff] }
 0x403   :  { %v3729_v8 = vld [vmem:[#allocation2 + $0xe8] sm:$0xff] }
 0x404   :  { %v5146_v11 = vpop.f32.mrb[38].mxu1 }
 0x405   :  { %v2713_v30 = vpop.f32.mrb[42].mxu0  ;;  %v4268_v22 = vpop.f32.mrb[39].mxu1 }
 0x406   :  { %v3166_v59 = vrot.slane %v2713_v30, 7  ;;  %v4283_v33 = vpop.f32.mrb[43].mxu0  ;;  %v3649_v22 = vld [vmem:[#allocation2 + $0xd8] sm:$0xff] }
 0x407   :  { %v4445_v33 = vpack.c.bf16 %v3729_v8, %v3728_v6 }
 0x408   :  { %v3168_v12 = vsel %vm3167_vm6, %v3166_v59, %v2129_v47  ;;  %v2640_v16 = vpop.f32.mrb[40].mxu1 }
 0x409   :  { %v3243_v35 = vrot.slane %v2640_v16, 7  ;;  %4323 = vmatmul.mubr.msk.f32.vlgmr.msra.gmra.mrb[48].mxu1 %vm592_vm3, %v3168_v12  ;;  %v4278_v38 = vpop.f32.mrb[41].mxu1 }
 0x40a   :  { %4416 = vmatpush3.bf16.msra.mxu1 %v4415_v23  ;;  %4344 = vmatprep.mubr.msk.f32.mxu1 %vm4576_vm2, %v4575_v21 }
 0x40b   :  { %v3244_v39 = vsel %vm3167_vm6, %v3243_v35, %v2056_v10  ;;  %4417 = vmatprep.subr.bf16.mxu1 %v4578_v63  ;;  %v3647_v10 = vld [vmem:[#allocation2 + $0xc8] sm:$0xff] }
 0x40c   :  { %v2786_v17 = vpop.f32.mrb[42].mxu1  ;;  %4334 = vmatmul.mubr.msk.f32.vlgmr.msra.gmra.mrb[50].mxu0 %vm592_vm3, %v3244_v39 }
 0x40d   :  { %v3324_v46 = vrot.slane %v2786_v17, 7  ;;  %4422 = vmatpush3.bf16.msra.mxu0 %v4421_v3  ;;  %v4288_v51 = vpop.f32.mrb[43].mxu1  ;;  %4355 = vmatprep.mubr.msk.f32.mxu0 %vm4576_vm2, %v4575_v21 }
 0x40e   :  { %v2859_v40 = vpop.f32.mrb[44].mxu0  ;;  %4419 = vmatpush3.bf16.msra.mxu1 %v4418_v7  ;;  %4423 = vmatprep.subr.bf16.mxu0 %v4578_v63 }
 0x40f   :  { %v3325_v20 = vsel %vm3167_vm6, %v3324_v46, %v2202_v61  ;;  %v3406_v57 = vrot.slane %v2859_v40, 7  ;;  %v4293_v24 = vpop.f32.mrb[45].mxu0  ;;  %4426 = vmatprep.subr.bf16.mxu1 %v4578_v63 }
 0x410   :  { %v2932_v62 = vpop.f32.mrb[44].mxu1 }
 0x411   :  { %v3407_v28 = vsel %vm3167_vm6, %v3406_v57, %v2275_v50  ;;  %v3488_v49 = vrot.slane %v2932_v62, 7  ;;  %4345 = vmatmul.mubr.msk.f32.vlgmr.msra.gmra.mrb[50].mxu1 %vm592_vm3, %v3325_v20  ;;  %4425 = vmatpush3.bf16.msra.mxu0 %v4424_v19  ;;  %v4298_v44 = vpop.f32.mrb[45].mxu1 }
 0x412   :  { %v3005_v29 = vpop.f32.mrb[46].mxu0  ;;  %4428 = vmatpush3.bf16.msra.mxu1 %v4427_v37  ;;  %4432 = vmatprep.subr.bf16.mxu0 %v4578_v63  ;;  %v3955_v37 = vld [vmem:[%s5214_s6] ss:$0 sm:$0xff] }
 0x413   :  { %v3489_v42 = vsel %vm3167_vm6, %v3488_v49, %v5142_v1  ;;  %v3570_v43 = vrot.slane %v3005_v29, 7  ;;  %v4303_v47 = vpop.f32.mrb[47].mxu0  ;;  %4429 = vmatprep.subr.bf16.mxu1 %v4578_v63  ;;  %4366 = vmatprep.mubr.msk.f32.mxu1 %vm4576_vm2, %v4575_v21  ;;  %v4439_v1 = vpack.c.bf16 %v3647_v10, %v3646_v5 }
 0x414   :  { %4356 = vmatmul.mubr.msk.f32.vlgmr.msra.gmra.mrb[52].mxu0 %vm592_vm3, %v3407_v28  ;;  %v3078_v50 = vpop.f32.mrb[46].mxu1 }
 0x415   :  { %v3571_v54 = vsel %vm3167_vm6, %v3570_v43, %v5140_v0  ;;  %v3652_v60 = vrot.slane %v3078_v50, 7  ;;  %4434 = vmatpush3.bf16.msra.mxu0 %v4433_v53  ;;  %v4308_v61 = vpop.f32.mrb[47].mxu1  ;;  %4377 = vmatprep.mubr.msk.f32.mxu0 %vm4576_vm2, %v4575_v21  ;;  %v3648_v0 = vld [vmem:[#allocation2 + $0xd0] sm:$0xff] }
 0x416   :  { %v3151_v14 = vpop.f32.mrb[48].mxu0  ;;  %4431 = vmatpush3.bf16.msra.mxu1 %v4430_v2  ;;  %4435 = vmatprep.subr.bf16.mxu0 %v4578_v63  ;;  %v4442_v23 = vpack.c.bf16 %v3649_v22, %v3648_v0 }
 0x417   :  { %v3653_v41 = vsel %vm3167_vm6, %v3652_v60, %v5146_v11  ;;  %v3734_v9 = vrot.slane %v3151_v14, 7  ;;  %v4313_v30 = vpop.f32.mrb[49].mxu0  ;;  %4438 = vmatprep.subr.bf16.mxu1 %v4578_v63  ;;  %v4448_v11 = vpack.c.bf16 %v3731_v34, %v3730_v31 }
 0x419   :  { %v3735_v59 = vsel %vm3167_vm6, %v3734_v9, %v5144_v4  ;;  %4367 = vmatmul.mubr.msk.f32.vlgmr.msra.gmra.mrb[52].mxu1 %vm592_vm3, %v3489_v42  ;;  %4437 = vmatpush3.bf16.msra.mxu0 %v4436_v13 }
 0x41a   :  { %4440 = vmatpush3.bf16.msra.mxu1 %v4439_v1  ;;  %4444 = vmatprep.subr.bf16.mxu0 %v4578_v63 }
 0x41b   :  { %4441 = vmatprep.subr.bf16.mxu1 %v4578_v63  ;;  %4388 = vmatprep.mubr.msk.f32.mxu1 %vm4576_vm2, %v4575_v21 }
 0x41c   :  { %4378 = vmatmul.mubr.msk.f32.vlgmr.msra.gmra.mrb[54].mxu0 %vm592_vm3, %v3571_v54 }
 0x41d   :  { %4446 = vmatpush3.bf16.msra.mxu0 %v4445_v33  ;;  %4399 = vmatprep.mubr.msk.f32.mxu0 %vm4576_vm2, %v4575_v21 }
 0x41e   :  { %4443 = vmatpush3.bf16.msra.mxu1 %v4442_v23  ;;  %4447 = vmatprep.subr.bf16.mxu0 %v4578_v63 }
 0x421   :  { %4389 = vmatmul.mubr.msk.f32.vlgmr.msra.gmra.mrb[54].mxu1 %vm592_vm3, %v3653_v41  ;;  %4449 = vmatpush3.bf16.msra.mxu0 %v4448_v11 }
 0x424   :  { %4400 = vmatmul.mubr.msk.f32.vlgmr.msra.gmra.mrb[56].mxu0 %vm592_vm3, %v3735_v59 }
 0x4dc   :  { %v3237_v4 = vpop.f32.mrb[48].mxu1 }
 0x4dd   :  { %v4324_v48 = vpop.f32.mrb[49].mxu1 }
 0x4df   :  { %v3313_v58 = vpop.f32.mrb[50].mxu0 }
 0x4e0   :  { %v3314_v12 = vadd.f32 %v3313_v58, %v3237_v4  ;;  %v4335_v16 = vpop.f32.mrb[51].mxu0 }
 0x4e4   :  { %v3394_v35 = vpop.f32.mrb[50].mxu1 }
 0x4e5   :  { %v3398_v38 = vadd.f32 %v3394_v35, %v3314_v12  ;;  %v4346_v3 = vpop.f32.mrb[51].mxu1 }
 0x4e7   :  { %v3476_v7 = vpop.f32.mrb[52].mxu0 }
 0x4e8   :  { %v3480_v32 = vadd.f32 %v3476_v7, %v3398_v38  ;;  %v4357_v18 = vpop.f32.mrb[53].mxu0 }
 0x4ec   :  { %v3558_v21 = vpop.f32.mrb[52].mxu1 }
 0x4ed   :  { %v3562_v39 = vadd.f32 %v3558_v21, %v3480_v32  ;;  %v4368_v45 = vpop.f32.mrb[53].mxu1 }
 0x4ef   :  { %v3640_v63 = vpop.f32.mrb[54].mxu0 }
 0x4f0   :  { %v3644_v15 = vadd.f32 %v3640_v63, %v3562_v39  ;;  %v4379_v17 = vpop.f32.mrb[55].mxu0 }
 0x4f4   :  { %v3722_v46 = vpop.f32.mrb[54].mxu1 }
 0x4f5   :  { %v3726_v51 = vadd.f32 %v3722_v46, %v3644_v15  ;;  %v4390_v19 = vpop.f32.mrb[55].mxu1 }
 0x4f7   :  { %v3804_v40 = vpop.f32.mrb[56].mxu0 }
 0x4f8   :  { %v3808_v52 = vadd.f32 %v3804_v40, %v3726_v51  ;;  %v4401_v36 = vpop.f32.mrb[57].mxu0 }
 0x4fa   :  { %v3816_v20 = vadd.f32 %v3955_v37, %v3808_v52 }
 0x4fc   :  { %v3824_v57 = vrot.slane %v3816_v20, %v4789_v55 }
 0x4fe   :  { %v3825_v24 = vcombine.high %v3824_v57, %v3824_v57  ;;  %v3832_v56 = vrot.slane %v3824_v57, %v4789_v55 }
 0x500   :  { %v3839_v25 = vrot.slane %v3825_v24, %v4789_v55  ;;  %3843 = vst.msk [vmem:[#allocation5] sm:$0x1] %vm3842_vm7, %v3832_v56 }
 0x502   :  { %3844 = vst.msk [vmem:[#allocation5 + $0x1] sm:$0x1] %vm3842_vm7, %v3839_v25 }
 0x503   :  { %4557 = shalt.err (!%p4554_p12)
}
 0x504   :  { %s4558_s8 = scalar_lea.hbm %s5215_s7, 32 }
 0x505   :  { %p4559_p13 = scmp.ne.s32.totalorder %s5215_s7, %s4558_s8  ;;  %p4562_p0 = scmp.lt.u32.totalorder %s4558_s8, %s5215_s7 }
 0x507   :  { %p4564_p1 = pnand %p4562_p0, %p4559_p13 }
 0x509   :  { %4567 = shalt.err (!%p4564_p1)
}
 0x50a   :  { %s4580_s12 = smov 16   ;;  %s4581_s13 = smov 1  }
 0x50b   :  { %3856 = dma.vmem_to_hbm [thread:$0]  %s3851_s28, 32, %s5215_s7, [#allocation4], %s4580_s12, %s4580_s12, %s4581_s13  }
 0x50c   :  { %4570 = dma.done.wait [#allocation4], 32  }
 0x50d   :  { %4571 = vsyncadd [#allocation4], 4294967264 }
 0x50e   :  { %3860 = vsyncpa [#allocation3], 1 }
 0x50f   :  { %3861 = vsyncpa [#allocation4], 1 }

</bundles_post_ra>
